<compile_context>
chip_gen: v7x
topology: tpu7x:2x2x1
jax: 0.10.0
libtpu: 0.0.40
codegen_flags: <defaults>
</compile_context>

<pallas_src>
import jax
import jax.numpy as jnp
from jax.experimental import pallas as pl
from jax.experimental.pallas import tpu as pltpu

_LANE = 128
_SUBLANE = 8


def _vmem_capacity_bytes() -> int:
    """Physical VMEM per core; conservative 64 MiB (v7x-sized) fallback."""
    try:
        info = pltpu.get_tpu_info()
        cap = int(getattr(info, "vmem_capacity_bytes", 0))
        if cap > 0:
            return cap
    except Exception:
        pass
    return 64 * 1024 * 1024


_VMEM_CAP = _vmem_capacity_bytes()
# Scoped-VMEM limit we request: half of physical (32 MiB on v7x, 64 MiB on
# v5e/v6e) — plenty of headroom for double-buffered x / pe / out tiles.
_VMEM_LIMIT = min(96 * 1024 * 1024, _VMEM_CAP // 2)
# Per-buffer tile target: ~vmem_limit/8 (6 live double-buffered tiles + slack).
# v7x: ~4 MiB, v5e/v6e: ~8 MiB.
_TILE_BYTES_TARGET = max(2 * 1024 * 1024, _VMEM_LIMIT // 8)


def make_positional_encoding(embed_dim: int, max_len: int = 5000) -> jnp.ndarray:
    """Deterministic buffer construction, identical to the PyTorch __init__.

    pe[:, 0::2] = sin(position / 10000**(arange(0, E, 2)/E))
    pe[:, 1::2] = cos(position / 10000**(arange(0, E, 2)/E))
    Returns pe with shape (1, max_len, embed_dim), float32.
    """
    assert embed_dim % 2 == 0, "embed_dim must be even (sin/cos interleave)"
    position = jnp.arange(max_len, dtype=jnp.float32)[:, None]              # (L, 1)
    div = jnp.power(
        10000.0, jnp.arange(0, embed_dim, 2, dtype=jnp.float32) / embed_dim
    )                                                                        # (E/2,)
    ang = position / div                                                     # (L, E/2)
    pe = jnp.stack([jnp.sin(ang), jnp.cos(ang)], axis=-1).reshape(max_len, embed_dim)
    return pe[None, :, :]                                                    # (1, L, E)


def _add_pe_kernel(x_ref, pe_ref, o_ref):
    # Elementwise broadcast-add; accumulate in f32 (parity with the PyTorch f32
    # pe buffer), cast to the output dtype on store.
    # Note: if x is bf16, PyTorch's `x + pe(f32)` would promote the *output* to
    # f32; here the output keeps x.dtype (differs by at most one bf16 ulp).
    o_ref[...] = (x_ref[...].astype(jnp.float32)
                  + pe_ref[...].astype(jnp.float32)).astype(o_ref.dtype)


def _pick_tile_rows(total_rows: int, row_bytes: int, tile_bytes_target: int) -> int:
    """Rows per tile.

    Returns a multiple of 8 (or the full extent when it already fits) such that
    one x tile stays <= tile_bytes_target, preferring a tile count that divides
    total_rows evenly (keeps every store full-width, no masked partial step).
    Returns 0 if even an 8-row tile would exceed the budget.
    """
    row_bytes = max(row_bytes, 1)
    if total_rows * row_bytes <= tile_bytes_target:
        return total_rows                      # whole extent in one tile
    cap = tile_bytes_target // row_bytes
    if cap < _SUBLANE:
        return 0                               # too heavy even at 8 rows
    cap = min(total_rows, (cap // _SUBLANE) * _SUBLANE)
    if total_rows % _SUBLANE == 0:
        t = cap
        while t >= _SUBLANE:                   # trace-time Python loop, cheap
            if total_rows % t == 0:
                if 2 * t >= cap:               # accept only if near the cap
                    return t
                break
            t -= _SUBLANE
    return cap


def _tiled_add(x3: jnp.ndarray, pe3: jnp.ndarray,
               vmem_limit: int, tile_target: int) -> jnp.ndarray:
    """out = x3 + pe3[:, :R] with x3: (B, R, C), pe3: (1, Rpe>=R, C).

    Tiles the row axis R (last dim C kept at full block width).  Partial last
    tiles may read pe/x rows past R: pe rows up to Rpe are valid data, and any
    block overhang past the array extent is clamped by the Pallas DMA; the
    corresponding output rows are masked on store, so the boundary is safe.
    """
    B, R, C = x3.shape
    x_item = jnp.dtype(x3.dtype).itemsize

    # ---- batch-folded path: single grid axis over row tiles ----------------
    ts = _pick_tile_rows(R, B * C * x_item, tile_target)
    if ts > 0:
        n_tiles = pl.cdiv(R, ts)
        # v7x megacore: don't leave a TensorCore idle when the data is large
        # enough that splitting is essentially free (no-op on v5e/v6e).
        if n_tiles == 1 and R >= 2 * _SUBLANE and B * R * C * x_item >= (4 << 20):
            half = -(-R // 2)
            ts = ((half + _SUBLANE - 1) // _SUBLANE) * _SUBLANE
            n_tiles = pl.cdiv(R, ts)
        return pl.pallas_call(
            _add_pe_kernel,
            out_shape=jax.ShapeDtypeStruct((B, R, C), x3.dtype),
            grid=(n_tiles,),
            in_specs=[
                pl.BlockSpec((B, ts, C), lambda s: (0, s, 0)),   # x tile (all batches)
                pl.BlockSpec((1, ts, C), lambda s: (0, s, 0)),   # pe tile (broadcast)
            ],
            out_specs=pl.BlockSpec((B, ts, C), lambda s: (0, s, 0)),
            compiler_params=pltpu.CompilerParams(
                dimension_semantics=("parallel",),
                vmem_limit_bytes=vmem_limit),
        )(x3, pe3)

    # ---- per-batch grid: row tiles OUTER, batch INNER -----------------------
    # pe's block index is constant across the inner (batch) steps, so Pallas
    # does not re-DMA the pe tile for every batch element.
    ts = _pick_tile_rows(R, C * x_item, tile_target)
    if ts == 0:
        ts = min(R, _SUBLANE)   # extreme-width safeguard; still legal
    grid = (pl.cdiv(R, ts), B)
    return pl.pallas_call(
        _add_pe_kernel,
        out_shape=jax.ShapeDtypeStruct((B, R, C), x3.dtype),
        grid=grid,
        in_specs=[
            pl.BlockSpec((1, ts, C), lambda s, b: (b, s, 0)),
            pl.BlockSpec((1, ts, C), lambda s, b: (0, s, 0)),
        ],
        out_specs=pl.BlockSpec((1, ts, C), lambda s, b: (b, s, 0)),
        compiler_params=pltpu.CompilerParams(
            dimension_semantics=("parallel", "parallel"),
            vmem_limit_bytes=vmem_limit),
    )(x3, pe3)


def positional_encoding_forward(x: jnp.ndarray, pe: jnp.ndarray) -> jnp.ndarray:
    """x: (B, S, E); pe: (1, max_len, E) float32. Returns x + pe[:, :S]."""
    B, S, E = x.shape
    assert pe.ndim == 3 and pe.shape[0] == 1 and pe.shape[2] == E and pe.shape[1] >= S

    # Pre-cast pe once when x is narrower (e.g. bf16): halves pe HBM reads and
    # its VMEM tile; the kernel still accumulates in f32.
    if (jnp.dtype(x.dtype) != jnp.dtype(pe.dtype)
            and jnp.dtype(x.dtype).itemsize < jnp.dtype(pe.dtype).itemsize):
        pe_used = pe.astype(x.dtype)
    else:
        pe_used = pe

    if E % _LANE == 0:
        # Path 1: natively lane-dense.  Pass the FULL (1, max_len, E) buffer and
        # let the BlockSpec index_map select the [:S] window (no wrapper slice).
        return _tiled_add(x, pe_used, _VMEM_LIMIT, _TILE_BYTES_TARGET)

    if (S * E) % _LANE == 0:
        # Path 2: flatten (S, E) into lane-dense rows of 128 so all stores are
        # unmasked.  x and pe reshape element-for-element identically, so the
        # broadcast add is unchanged.  (Tile cap bug fixed: same multi-MiB
        # target as Path 1.)
        rows = (S * E) // _LANE
        x2 = x.reshape(B, rows, _LANE)                       # contiguous -> free
        pe2 = pe_used[:, :S, :].reshape(1, rows, _LANE)      # tiny static slice
        out2 = _tiled_add(x2, pe2, _VMEM_LIMIT, _TILE_BYTES_TARGET)
        return out2.reshape(B, S, E)

    # Path 3: awkward last dim.  Keep E at full block extent (legal) and tile
    # the sequence axis so VMEM stays bounded even for large S.
    pe_s = pe_used[:, :S, :]
    return _tiled_add(x, pe_s, _VMEM_LIMIT, _TILE_BYTES_TARGET)


if __name__ == "__main__":
    key = jax.random.PRNGKey(0)
    k1, k2, k3 = jax.random.split(key, 3)

    # Case 1: module-demo shapes (E=32 not a multiple of 128 -> flattened
    # lane-dense path with batch folding).
    B, S, E, MAX_LEN = 2, 8, 32, 64
    x = jax.random.normal(k1, (B, S, E), dtype=jnp.float32)
    pe = make_positional_encoding(E, max_len=MAX_LEN)
    out = jax.block_until_ready(positional_encoding_forward(x, pe))
    ref = (x.astype(jnp.float32) + pe[:, :S, :]).astype(x.dtype)
    assert out.shape == (B, S, E)
    assert jnp.allclose(out, ref, atol=1e-6, rtol=1e-6), "mismatch vs reference (case 1)"

    # Case 2: lane-dense embed dim (E=128) -> the [:S] window of the full pe
    # buffer is selected by the BlockSpec index_map, batch folded into the block.
    B2, S2, E2, MAX_LEN2 = 2, 16, 128, 64
    x2 = jax.random.normal(k2, (B2, S2, E2), dtype=jnp.float32)
    pe2 = make_positional_encoding(E2, max_len=MAX_LEN2)
    out2 = jax.block_until_ready(positional_encoding_forward(x2, pe2))
    ref2 = (x2.astype(jnp.float32) + pe2[:, :S2, :]).astype(x2.dtype)
    assert out2.shape == (B2, S2, E2)
    assert jnp.allclose(out2, ref2, atol=1e-6, rtol=1e-6), "mismatch vs reference (case 2)"

    # Case 3: bf16 activations -> pe is pre-cast to bf16 in the wrapper (half
    # the pe DMA traffic); f32 accumulate inside the kernel, bf16 store.
    x3 = jax.random.normal(k3, (B2, S2, E2), dtype=jnp.float32).astype(jnp.bfloat16)
    out3 = jax.block_until_ready(positional_encoding_forward(x3, pe2))
    ref3 = (x3.astype(jnp.float32)
            + pe2[:, :S2, :].astype(jnp.bfloat16).astype(jnp.float32)
            ).astype(jnp.bfloat16)
    assert out3.shape == (B2, S2, E2)
    assert jnp.allclose(out3.astype(jnp.float32), ref3.astype(jnp.float32),
                        atol=1e-2, rtol=1e-2), "mismatch vs reference (case 3)"

    print("KERNEL_OK")
</pallas_src>

<mosaic_0001>
module attributes {stable_mosaic.version = 11 : i64} {
  func.func @_add_pe_kernel(%arg0: i32, %arg1: memref<2x2x128xf32, #tpu.memory_space<vmem>>, %arg2: memref<1x2x128xf32, #tpu.memory_space<vmem>>, %arg3: memref<2x2x128xf32, #tpu.memory_space<vmem>>) attributes {dimension_semantics = [#tpu.dimension_semantics<parallel>], iteration_bounds = array<i64: 1>, scalar_prefetch = 0 : i64, scratch_operands = 0 : i64, tpu.core_type = #tpu.core_type<tc>, window_params = [{transform_indices = @transform_0, window_bounds = array<i64: 2, 2, 128>}, {transform_indices = @transform_1, window_bounds = array<i64: 1, 2, 128>}, {transform_indices = @transform_2, window_bounds = array<i64: 2, 2, 128>}]} {
    %c0 = arith.constant 0 : index
    %c0_0 = arith.constant 0 : index
    %c0_1 = arith.constant 0 : index
    %0 = vector.load %arg1[%c0, %c0_0, %c0_1] : memref<2x2x128xf32, #tpu.memory_space<vmem>>, vector<2x2x128xf32>
    %c0_2 = arith.constant 0 : index
    %c0_3 = arith.constant 0 : index
    %c0_4 = arith.constant 0 : index
    %1 = vector.load %arg2[%c0_2, %c0_3, %c0_4] : memref<1x2x128xf32, #tpu.memory_space<vmem>>, vector<1x2x128xf32>
    %2 = vector.broadcast %1 : vector<1x2x128xf32> to vector<2x2x128xf32>
    %3 = arith.addf %0, %2 : vector<2x2x128xf32>
    %c0_5 = arith.constant 0 : index
    %c0_6 = arith.constant 0 : index
    %c0_7 = arith.constant 0 : index
    %4 = vector.load %arg3[%c0_5, %c0_6, %c0_7] : memref<2x2x128xf32, #tpu.memory_space<vmem>>, vector<2x2x128xf32>
    tpu.vector_store %arg3[%c0_5, %c0_6, %c0_7], %3 {strides = array<i32>} : memref<2x2x128xf32, #tpu.memory_space<vmem>>, vector<2x2x128xf32>,
    return
  }
  func.func @transform_0(%arg0: i32) -> (i32, i32, i32) {
    %c0_i32 = arith.constant 0 : i32
    %c0_i32_0 = arith.constant 0 : i32
    %c0_i32_1 = arith.constant 0 : i32
    return %c0_i32, %arg0, %c0_i32_0 : i32, i32, i32
  }
  func.func @transform_1(%arg0: i32) -> (i32, i32, i32) {
    %c0_i32 = arith.constant 0 : i32
    %c0_i32_0 = arith.constant 0 : i32
    %c0_i32_1 = arith.constant 0 : i32
    return %c0_i32, %arg0, %c0_i32_0 : i32, i32, i32
  }
  func.func @transform_2(%arg0: i32) -> (i32, i32, i32) {
    %c0_i32 = arith.constant 0 : i32
    %c0_i32_0 = arith.constant 0 : i32
    %c0_i32_1 = arith.constant 0 : i32
    return %c0_i32, %arg0, %c0_i32_0 : i32, i32, i32
  }
}

</mosaic_0001>

<bundles_post_ra>
// kernel: tpu_custom_call.1
= control target key start
LH: loop header
LB: loop body
LE: loop exit
PB: predicated region body
PF: predicated region fallthrough
CT: control target
= control target key end

     0   :  { %7 = vsyncpa [#allocation3], 0  ;;  %s154_s0 = inlined_call_operand.hbm [shape: f32[2,2,128], index: 0, kind: input, shape index: {}]   ;;  %s155_s1 = inlined_call_operand.vmem [shape: f32[1,2,128], index: 1, kind: input, shape index: {}]   ;;  %s156_s2 = inlined_call_operand.hbm [shape: f32[2,2,128], index: 2, kind: output, shape index: {}]  }
   0x1   :  { %8 = vsyncpa [#allocation4], 0  ;;  %s102_s9 = smov [#allocation2]   ;;  %s54_s13 = scalar_lea.hbm %s154_s0, 64 }
   0x2   :  { %s14_s10 = sshll.u32 %s102_s9, 4  ;;  %p55_p0 = scmp.ne.s32.totalorder %s154_s0, %s54_s13  ;;  %s15_s10 = int_to_ptr.vmem [resolvable:$true] %s14_s10 }
   0x3   :  { %p58_p1 = scmp.lt.u32.totalorder %s54_s13, %s154_s0 }
   0x5   :  { %p60_p2 = pnand %p58_p1, %p55_p0 }
   0x7   :  { %63 = shalt.err (!%p60_p2)
}
   0x8   :  { %s64_s18 = scalar_lea.vmem %s15_s10, 64  ;;  %p69_p4 = scmp.lt.s32.totalorder %s15_s10, %s15_s10 }
   0x9   :  { %p65_p3 = scmp.ne.s32.totalorder %s15_s10, %s64_s18  ;;  %p70_p5 = scmp.lt.s32.totalorder %s64_s18, %s64_s18 }
   0xb   :  { %p71_p6 = por %p70_p5, %p69_p4 }
   0xd   :  { %p72_p7 = pnand %p71_p6, %p65_p3 }
   0xf   :  { %75 = shalt.err (!%p72_p7)
}
  0x10   :  { %s103_s19 = smov 32   ;;  %s104_s20 = smov 2  }
  0x11   :  { %20 = dma.hbm_to_vmem [thread:$0]  %s154_s0, 64, %s15_s10, [#allocation3], %s103_s19, %s103_s19, %s104_s20  }
  0x12   :  { %98 = dma.done.wait [#allocation3], 64  }
  0x13   :  { %99 = vsyncadd [#allocation3], 4294967232  ;;  %s105_s23 = smov [#allocation5]   ;;  %v26_v0 = vld [vmem:[#allocation2] sm:$0x3] }
  0x14   :  { %s38_s24 = sshll.u32 %s105_s23, 4  ;;  %v28_v1 = vld [vmem:[%s155_s1] sm:$0x3]  ;;  %v27_v2 = vld [vmem:[#allocation2 + $0x2] sm:$0x3]  ;;  %s39_s24 = int_to_ptr.vmem [resolvable:$true] %s38_s24 }
  0x15   :  { %v29_v3 = vadd.f32 %v28_v1, %v26_v0  ;;  %v30_v4 = vadd.f32 %v28_v1, %v27_v2  ;;  %s76_s27 = scalar_lea.vmem %s39_s24, 64  ;;  %p81_p9 = scmp.lt.s32.totalorder %s39_s24, %s39_s24 }
  0x16   :  { %p77_p8 = scmp.ne.s32.totalorder %s39_s24, %s76_s27  ;;  %p82_p10 = scmp.lt.s32.totalorder %s76_s27, %s76_s27 }
  0x17   :  { %31 = vst [vmem:[#allocation5] sm:$0x3] %v29_v3  ;;  %32 = vst [vmem:[#allocation5 + $0x2] sm:$0x3] %v30_v4 }
  0x18   :  { %p83_p11 = por %p82_p10, %p81_p9 }
  0x1a   :  { %p84_p12 = pnand %p83_p11, %p77_p8 }
  0x1c   :  { %87 = shalt.err (!%p84_p12)
}
  0x1d   :  { %s88_s29 = scalar_lea.hbm %s156_s2, 64 }
  0x1e   :  { %p89_p13 = scmp.ne.s32.totalorder %s156_s2, %s88_s29  ;;  %p92_p0 = scmp.lt.u32.totalorder %s88_s29, %s156_s2 }
  0x20   :  { %p94_p1 = pnand %p92_p0, %p89_p13 }
  0x22   :  { %97 = shalt.err (!%p94_p1)
}
  0x23   :  { %44 = dma.vmem_to_hbm [thread:$0]  %s39_s24, 64, %s156_s2, [#allocation4], %s103_s19, %s103_s19, %s104_s20  }
  0x24   :  { %100 = dma.done.wait [#allocation4], 64  }
  0x25   :  { %101 = vsyncadd [#allocation4], 4294967232 }
  0x26   :  { %48 = vsyncpa [#allocation3], 1 }
  0x27   :  { %49 = vsyncpa [#allocation4], 1 }

</bundles_post_ra>
